<compile_context>
chip_gen: v6e
topology: v6e:2x2x1
jax: 0.10.0
libtpu: 0.0.40
codegen_flags: <defaults>
</compile_context>

<pallas_src>
import jax
import jax.numpy as jnp
from jax.experimental import pallas as pl
from jax.experimental.pallas import tpu as pltpu

IN_DIM = 5            # true input_dim of PockerNN
IN_PAD = 8            # input lanes padded 5 -> 8 (block last dim == full array dim)
H4_PAD = 128          # 64-wide hidden layer padded to a full lane register
OUT_PAD = 8           # true output width is 1; 8 keeps writeback narrow & legal
HIDDEN = (256, 512, 256, 64)
TILE_B = 1024         # batch rows per grid step (sweep 512/1024/2048 per chip)

MIN_VALUES = jnp.array([0.0, 0.0, 0.0, 0.0, 0.0], jnp.float32)
MAX_VALUES = jnp.array([50.0, 50.0, 1.0, 12.0, 1.0], jnp.float32)


def pocker_kernel(x_ref,
                  w1_ref, b1_ref, w2_ref, b2_ref, w3_ref, b3_ref,
                  w4_ref, b4_ref, w5_ref, b5_ref,
                  out_ref):
    # Input normalization is folded into (w1, b1) at parameter-prep time, so the
    # kernel is a pure 5-layer MLP. Layers 2-4 (the bulk of the FLOPs) run with
    # bf16 operands and f32 MXU accumulation; the tiny first (K=8) and last (N=8)
    # layers stay f32 for accuracy.
    h = jnp.dot(x_ref[...], w1_ref[...], preferred_element_type=jnp.float32) + b1_ref[...]
    h = jnp.maximum(h, 0.0)
    h = jnp.dot(h.astype(jnp.bfloat16), w2_ref[...],
                preferred_element_type=jnp.float32) + b2_ref[...]
    h = jnp.maximum(h, 0.0)
    h = jnp.dot(h.astype(jnp.bfloat16), w3_ref[...],
                preferred_element_type=jnp.float32) + b3_ref[...]
    h = jnp.maximum(h, 0.0)
    h = jnp.dot(h.astype(jnp.bfloat16), w4_ref[...],
                preferred_element_type=jnp.float32) + b4_ref[...]
    h = jnp.maximum(h, 0.0)
    # final Linear(64, 1): weight padded to (H4_PAD, OUT_PAD); only column 0 is real.
    out_ref[...] = jnp.dot(h, w5_ref[...], preferred_element_type=jnp.float32) + b5_ref[...]


def xavier_uniform(key, fan_in, fan_out):
    # matches torch.nn.init.xavier_uniform_ bound for a Linear(fan_in -> fan_out)
    bound = jnp.sqrt(6.0 / (fan_in + fan_out))
    # stored as [in, out] so the kernel computes h @ W
    return jax.random.uniform(key, (fan_in, fan_out), jnp.float32, -bound, bound)


def make_params(key):
    dims = (IN_DIM,) + HIDDEN + (1,)
    keys = jax.random.split(key, len(dims) - 1)
    ws, bs = [], []
    for k, fi, fo in zip(keys, dims[:-1], dims[1:]):
        ws.append(xavier_uniform(k, fi, fo))
        bs.append(jnp.zeros((fo,), jnp.float32))
    return ws, bs


def prepare_padded_params(ws, bs):
    """Done ONCE at init (outside the per-call path):
       - fold the (x - min) / (max - min) normalization into (W1, b1) (exact affine fold),
       - zero-pad W1 input rows (5 -> 8), the 64-wide hidden layer (-> 128 lanes) and
         the output (1 -> 8 lanes); all padding is mathematically inert,
       - cast the three bulk weight matrices to bf16 (f32 accumulation in-kernel)."""
    inv_range = 1.0 / (MAX_VALUES - MIN_VALUES)
    w1_fold = ws[0] * inv_range[:, None]                   # diag(inv_range) @ W1
    b1_fold = bs[0] - (MIN_VALUES * inv_range) @ ws[0]     # exact affine fold (f32)

    w1 = jnp.zeros((IN_PAD, HIDDEN[0]), jnp.float32).at[:IN_DIM, :].set(w1_fold)
    w2 = ws[1].astype(jnp.bfloat16)
    w3 = ws[2].astype(jnp.bfloat16)
    w4 = (jnp.zeros((HIDDEN[2], H4_PAD), jnp.float32)
          .at[:, :HIDDEN[3]].set(ws[3])).astype(jnp.bfloat16)
    b4 = jnp.zeros((1, H4_PAD), jnp.float32).at[0, :HIDDEN[3]].set(bs[3])
    w5 = jnp.zeros((H4_PAD, OUT_PAD), jnp.float32).at[:HIDDEN[3], :1].set(ws[4])
    b5 = jnp.zeros((1, OUT_PAD), jnp.float32).at[0, :1].set(bs[4])

    pws = [w1, w2, w3, w4, w5]
    pbs = [b1_fold[None, :], bs[1][None, :], bs[2][None, :], b4, b5]
    return pws, pbs


def _round_up(n, m):
    return ((n + m - 1) // m) * m


@jax.jit
def pocker_nn_forward(x, pws, pbs):
    """x: [batch, 5] float32 -> [batch, 1] float32 (same semantics as PockerNN.forward)."""
    batch = x.shape[0]
    # Batch tile: 1024 rows when the batch is large (amortizes per-grid-step overhead
    # and keeps the MXU full), otherwise just round the batch up to a sublane multiple.
    tile_b = TILE_B if batch >= TILE_B else _round_up(batch, 8)
    num_tiles = pl.cdiv(batch, tile_b)

    # Lane pad only (5 -> 8). The batch axis is NOT padded: the ragged last tile is
    # handled by Pallas block masking (garbage rows never reach a stored output row).
    x_pad = jnp.pad(x, ((0, 0), (0, IN_PAD - IN_DIM)))

    # Weights/biases: full-array blocks with a constant index_map, so they are DMA'd
    # once and stay resident in VMEM while batch tiles stream through the grid.
    def const_spec(arr):
        return pl.BlockSpec(arr.shape, lambda i: (0, 0))

    in_specs = [pl.BlockSpec((tile_b, IN_PAD), lambda i: (i, 0))]
    inputs = [x_pad]
    for w, b in zip(pws, pbs):
        in_specs += [const_spec(w), const_spec(b)]
        inputs += [w, b]

    # Advisory cost estimate so XLA schedules the custom call sensibly in larger graphs.
    weight_bytes = sum(int(a.size) * a.dtype.itemsize for a in (*pws, *pbs))
    macs_per_row = (IN_PAD * HIDDEN[0] + HIDDEN[0] * HIDDEN[1]
                    + HIDDEN[1] * HIDDEN[2] + HIDDEN[2] * H4_PAD
                    + H4_PAD * OUT_PAD)
    cost = pl.CostEstimate(
        flops=2 * batch * macs_per_row,
        transcendentals=0,
        bytes_accessed=batch * IN_PAD * 4 + batch * OUT_PAD * 4 + weight_bytes,
    )

    out_pad = pl.pallas_call(
        pocker_kernel,
        out_shape=jax.ShapeDtypeStruct((batch, OUT_PAD), jnp.float32),
        grid=(num_tiles,),
        in_specs=in_specs,
        out_specs=pl.BlockSpec((tile_b, OUT_PAD), lambda i: (i, 0)),
        compiler_params=pltpu.CompilerParams(
            dimension_semantics=("parallel",),   # batch tiles are independent
            vmem_limit_bytes=32 << 20,           # ~10 MiB working set at TILE_B=1024
        ),
        cost_estimate=cost,
    )(*inputs)

    return out_pad[:, :1]


def pocker_nn_reference(x, ws, bs):
    h = (x - MIN_VALUES) / (MAX_VALUES - MIN_VALUES)
    for i in range(4):
        h = jnp.maximum(h @ ws[i] + bs[i], 0.0)
    return h @ ws[4] + bs[4]


if __name__ == "__main__":
    key = jax.random.PRNGKey(0)
    k_param, k_x = jax.random.split(key)

    ws, bs = make_params(k_param)
    pws, pbs = prepare_padded_params(ws, bs)   # once, outside the per-call path

    # small deterministic input batch in the expected (pre-normalization) ranges
    batch = 8
    scale = jnp.array([50.0, 50.0, 1.0, 12.0, 1.0], jnp.float32)
    x = jax.random.uniform(k_x, (batch, IN_DIM), jnp.float32) * scale

    out = jax.block_until_ready(pocker_nn_forward(x, pws, pbs))

    ref = pocker_nn_reference(x, ws, bs)
    assert out.shape == (batch, 1), out.shape
    # layers 2-4 use bf16 weights/activations (f32 accumulation) -> relaxed tolerance
    assert jnp.allclose(out, ref, atol=2e-2, rtol=2e-2), (out, ref)

    print("KERNEL_OK")
</pallas_src>

<mosaic_0001>
module attributes {stable_mosaic.version = 11 : i64} {
  func.func @pocker_kernel(%arg0: i32, %arg1: memref<8x8xf32, #tpu.memory_space<vmem>>, %arg2: memref<8x256xf32, #tpu.memory_space<vmem>>, %arg3: memref<1x256xf32, #tpu.memory_space<vmem>>, %arg4: memref<256x512xbf16, #tpu.memory_space<vmem>>, %arg5: memref<1x512xf32, #tpu.memory_space<vmem>>, %arg6: memref<512x256xbf16, #tpu.memory_space<vmem>>, %arg7: memref<1x256xf32, #tpu.memory_space<vmem>>, %arg8: memref<256x128xbf16, #tpu.memory_space<vmem>>, %arg9: memref<1x128xf32, #tpu.memory_space<vmem>>, %arg10: memref<128x8xf32, #tpu.memory_space<vmem>>, %arg11: memref<1x8xf32, #tpu.memory_space<vmem>>, %arg12: memref<8x8xf32, #tpu.memory_space<vmem>>) attributes {dimension_semantics = [#tpu.dimension_semantics<parallel>], iteration_bounds = array<i64: 1>, scalar_prefetch = 0 : i64, scratch_operands = 0 : i64, tpu.core_type = #tpu.core_type<tc>, window_params = [{transform_indices = @transform_0, window_bounds = array<i64: 8, 8>}, {pipeline_mode = #tpu.pipeline_mode<synchronous>, transform_indices = @transform_1, window_bounds = array<i64: 8, 256>}, {pipeline_mode = #tpu.pipeline_mode<synchronous>, transform_indices = @transform_2, window_bounds = array<i64: 1, 256>}, {pipeline_mode = #tpu.pipeline_mode<synchronous>, transform_indices = @transform_3, window_bounds = array<i64: 256, 512>}, {pipeline_mode = #tpu.pipeline_mode<synchronous>, transform_indices = @transform_4, window_bounds = array<i64: 1, 512>}, {pipeline_mode = #tpu.pipeline_mode<synchronous>, transform_indices = @transform_5, window_bounds = array<i64: 512, 256>}, {pipeline_mode = #tpu.pipeline_mode<synchronous>, transform_indices = @transform_6, window_bounds = array<i64: 1, 256>}, {pipeline_mode = #tpu.pipeline_mode<synchronous>, transform_indices = @transform_7, window_bounds = array<i64: 256, 128>}, {pipeline_mode = #tpu.pipeline_mode<synchronous>, transform_indices = @transform_8, window_bounds = array<i64: 1, 128>}, {pipeline_mode = #tpu.pipeline_mode<synchronous>, transform_indices = @transform_9, window_bounds = array<i64: 128, 8>}, {pipeline_mode = #tpu.pipeline_mode<synchronous>, transform_indices = @transform_10, window_bounds = array<i64: 1, 8>}, {transform_indices = @transform_11, window_bounds = array<i64: 8, 8>}]} {
    %c0 = arith.constant 0 : index
    %c0_0 = arith.constant 0 : index
    %0 = vector.load %arg1[%c0, %c0_0] : memref<8x8xf32, #tpu.memory_space<vmem>>, vector<8x8xf32>
    %c0_1 = arith.constant 0 : index
    %c0_2 = arith.constant 0 : index
    %1 = vector.load %arg2[%c0_1, %c0_2] : memref<8x256xf32, #tpu.memory_space<vmem>>, vector<8x256xf32>
    %cst = arith.constant dense<0.000000e+00> : vector<8x256xf32>
    %2 = tpu.matmul %0, %1, %cst {dimension_numbers = #tpu.dot_dimension_numbers<[1], [0], [0], [1], [0, 0, 1, 1], [], []>} : vector<8x8xf32>, vector<8x256xf32>, vector<8x256xf32> -> vector<8x256xf32>
    %c0_3 = arith.constant 0 : index
    %c0_4 = arith.constant 0 : index
    %3 = vector.load %arg3[%c0_3, %c0_4] : memref<1x256xf32, #tpu.memory_space<vmem>>, vector<1x256xf32>
    %4 = vector.broadcast %3 : vector<1x256xf32> to vector<8x256xf32>
    %5 = arith.addf %2, %4 : vector<8x256xf32>
    %cst_5 = arith.constant 0.000000e+00 : f32
    %6 = vector.broadcast %cst_5 : f32 to vector<8x256xf32>
    %7 = arith.maximumf %5, %6 : vector<8x256xf32>
    %8 = arith.truncf %7 : vector<8x256xf32> to vector<8x256xbf16>
    %c0_6 = arith.constant 0 : index
    %c0_7 = arith.constant 0 : index
    %9 = vector.load %arg4[%c0_6, %c0_7] : memref<256x512xbf16, #tpu.memory_space<vmem>>, vector<256x512xbf16>
    %cst_8 = arith.constant dense<0.000000e+00> : vector<8x512xf32>
    %10 = tpu.matmul %8, %9, %cst_8 {dimension_numbers = #tpu.dot_dimension_numbers<[1], [0], [0], [1], [0, 0, 1, 1], [], []>} : vector<8x256xbf16>, vector<256x512xbf16>, vector<8x512xf32> -> vector<8x512xf32>
    %c0_9 = arith.constant 0 : index
    %c0_10 = arith.constant 0 : index
    %11 = vector.load %arg5[%c0_9, %c0_10] : memref<1x512xf32, #tpu.memory_space<vmem>>, vector<1x512xf32>
    %12 = vector.broadcast %11 : vector<1x512xf32> to vector<8x512xf32>
    %13 = arith.addf %10, %12 : vector<8x512xf32>
    %cst_11 = arith.constant 0.000000e+00 : f32
    %14 = vector.broadcast %cst_11 : f32 to vector<8x512xf32>
    %15 = arith.maximumf %13, %14 : vector<8x512xf32>
    %16 = arith.truncf %15 : vector<8x512xf32> to vector<8x512xbf16>
    %c0_12 = arith.constant 0 : index
    %c0_13 = arith.constant 0 : index
    %17 = vector.load %arg6[%c0_12, %c0_13] : memref<512x256xbf16, #tpu.memory_space<vmem>>, vector<512x256xbf16>
    %cst_14 = arith.constant dense<0.000000e+00> : vector<8x256xf32>
    %18 = tpu.matmul %16, %17, %cst_14 {dimension_numbers = #tpu.dot_dimension_numbers<[1], [0], [0], [1], [0, 0, 1, 1], [], []>} : vector<8x512xbf16>, vector<512x256xbf16>, vector<8x256xf32> -> vector<8x256xf32>
    %c0_15 = arith.constant 0 : index
    %c0_16 = arith.constant 0 : index
    %19 = vector.load %arg7[%c0_15, %c0_16] : memref<1x256xf32, #tpu.memory_space<vmem>>, vector<1x256xf32>
    %20 = vector.broadcast %19 : vector<1x256xf32> to vector<8x256xf32>
    %21 = arith.addf %18, %20 : vector<8x256xf32>
    %cst_17 = arith.constant 0.000000e+00 : f32
    %22 = vector.broadcast %cst_17 : f32 to vector<8x256xf32>
    %23 = arith.maximumf %21, %22 : vector<8x256xf32>
    %24 = arith.truncf %23 : vector<8x256xf32> to vector<8x256xbf16>
    %c0_18 = arith.constant 0 : index
    %c0_19 = arith.constant 0 : index
    %25 = vector.load %arg8[%c0_18, %c0_19] : memref<256x128xbf16, #tpu.memory_space<vmem>>, vector<256x128xbf16>
    %cst_20 = arith.constant dense<0.000000e+00> : vector<8x128xf32>
    %26 = tpu.matmul %24, %25, %cst_20 {dimension_numbers = #tpu.dot_dimension_numbers<[1], [0], [0], [1], [0, 0, 1, 1], [], []>} : vector<8x256xbf16>, vector<256x128xbf16>, vector<8x128xf32> -> vector<8x128xf32>
    %c0_21 = arith.constant 0 : index
    %c0_22 = arith.constant 0 : index
    %27 = vector.load %arg9[%c0_21, %c0_22] : memref<1x128xf32, #tpu.memory_space<vmem>>, vector<1x128xf32>
    %28 = vector.broadcast %27 : vector<1x128xf32> to vector<8x128xf32>
    %29 = arith.addf %26, %28 : vector<8x128xf32>
    %cst_23 = arith.constant 0.000000e+00 : f32
    %30 = vector.broadcast %cst_23 : f32 to vector<8x128xf32>
    %31 = arith.maximumf %29, %30 : vector<8x128xf32>
    %c0_24 = arith.constant 0 : index
    %c0_25 = arith.constant 0 : index
    %32 = vector.load %arg10[%c0_24, %c0_25] : memref<128x8xf32, #tpu.memory_space<vmem>>, vector<128x8xf32>
    %cst_26 = arith.constant dense<0.000000e+00> : vector<8x8xf32>
    %33 = tpu.matmul %31, %32, %cst_26 {dimension_numbers = #tpu.dot_dimension_numbers<[1], [0], [0], [1], [0, 0, 1, 1], [], []>} : vector<8x128xf32>, vector<128x8xf32>, vector<8x8xf32> -> vector<8x8xf32>
    %c0_27 = arith.constant 0 : index
    %c0_28 = arith.constant 0 : index
    %34 = vector.load %arg11[%c0_27, %c0_28] : memref<1x8xf32, #tpu.memory_space<vmem>>, vector<1x8xf32>
    %35 = vector.broadcast %34 : vector<1x8xf32> to vector<8x8xf32>
    %36 = arith.addf %33, %35 : vector<8x8xf32>
    %c0_29 = arith.constant 0 : index
    %c0_30 = arith.constant 0 : index
    %37 = vector.load %arg12[%c0_29, %c0_30] : memref<8x8xf32, #tpu.memory_space<vmem>>, vector<8x8xf32>
    tpu.vector_store %arg12[%c0_29, %c0_30], %36 {strides = array<i32>} : memref<8x8xf32, #tpu.memory_space<vmem>>, vector<8x8xf32>,
    return
  }
  func.func @transform_0(%arg0: i32) -> (i32, i32) {
    %c0_i32 = arith.constant 0 : i32
    %c0_i32_0 = arith.constant 0 : i32
    return %arg0, %c0_i32 : i32, i32
  }
  func.func @transform_1(%arg0: i32) -> (i32, i32) {
    %c0_i32 = arith.constant 0 : i32
    %c0_i32_0 = arith.constant 0 : i32
    %c0_i32_1 = arith.constant 0 : i32
    return %c0_i32, %c0_i32_0 : i32, i32
  }
  func.func @transform_2(%arg0: i32) -> (i32, i32) {
    %c0_i32 = arith.constant 0 : i32
    %c0_i32_0 = arith.constant 0 : i32
    %c0_i32_1 = arith.constant 0 : i32
    return %c0_i32, %c0_i32_0 : i32, i32
  }
  func.func @transform_3(%arg0: i32) -> (i32, i32) {
    %c0_i32 = arith.constant 0 : i32
    %c0_i32_0 = arith.constant 0 : i32
    %c0_i32_1 = arith.constant 0 : i32
    return %c0_i32, %c0_i32_0 : i32, i32
  }
  func.func @transform_4(%arg0: i32) -> (i32, i32) {
    %c0_i32 = arith.constant 0 : i32
    %c0_i32_0 = arith.constant 0 : i32
    %c0_i32_1 = arith.constant 0 : i32
    return %c0_i32, %c0_i32_0 : i32, i32
  }
  func.func @transform_5(%arg0: i32) -> (i32, i32) {
    %c0_i32 = arith.constant 0 : i32
    %c0_i32_0 = arith.constant 0 : i32
    %c0_i32_1 = arith.constant 0 : i32
    return %c0_i32, %c0_i32_0 : i32, i32
  }
  func.func @transform_6(%arg0: i32) -> (i32, i32) {
    %c0_i32 = arith.constant 0 : i32
    %c0_i32_0 = arith.constant 0 : i32
    %c0_i32_1 = arith.constant 0 : i32
    return %c0_i32, %c0_i32_0 : i32, i32
  }
  func.func @transform_7(%arg0: i32) -> (i32, i32) {
    %c0_i32 = arith.constant 0 : i32
    %c0_i32_0 = arith.constant 0 : i32
    %c0_i32_1 = arith.constant 0 : i32
    return %c0_i32, %c0_i32_0 : i32, i32
  }
  func.func @transform_8(%arg0: i32) -> (i32, i32) {
    %c0_i32 = arith.constant 0 : i32
    %c0_i32_0 = arith.constant 0 : i32
    %c0_i32_1 = arith.constant 0 : i32
    return %c0_i32, %c0_i32_0 : i32, i32
  }
  func.func @transform_9(%arg0: i32) -> (i32, i32) {
    %c0_i32 = arith.constant 0 : i32
    %c0_i32_0 = arith.constant 0 : i32
    %c0_i32_1 = arith.constant 0 : i32
    return %c0_i32, %c0_i32_0 : i32, i32
  }
  func.func @transform_10(%arg0: i32) -> (i32, i32) {
    %c0_i32 = arith.constant 0 : i32
    %c0_i32_0 = arith.constant 0 : i32
    %c0_i32_1 = arith.constant 0 : i32
    return %c0_i32, %c0_i32_0 : i32, i32
  }
  func.func @transform_11(%arg0: i32) -> (i32, i32) {
    %c0_i32 = arith.constant 0 : i32
    %c0_i32_0 = arith.constant 0 : i32
    return %arg0, %c0_i32 : i32, i32
  }
}

</mosaic_0001>

<bundles_post_ra>
// kernel: pocker_nn_forward.1
= control target key start
LH: loop header
LB: loop body
LE: loop exit
PB: predicated region body
PF: predicated region fallthrough
CT: control target
= control target key end

     0   :  { %16 = vsyncpa [#allocation3], 0  ;;  %s2129_s0 = inlined_call_operand.vmem [shape: f32[8,8], index: 0, kind: input, shape index: {}]   ;;  %s2130_s1 = inlined_call_operand.vmem [shape: f32[8,256], index: 1, kind: input, shape index: {}]   ;;  %s2131_s2 = inlined_call_operand.vmem [shape: f32[1,256], index: 2, kind: input, shape index: {}]   ;;  %s2132_s3 = inlined_call_operand.hbm [shape: bf16[256,512], index: 3, kind: input, shape index: {}]   ;;  %s2133_s4 = inlined_call_operand.vmem [shape: f32[1,512], index: 4, kind: input, shape index: {}]   ;;  %s2134_s5 = inlined_call_operand.hbm [shape: bf16[512,256], index: 5, kind: input, shape index: {}]   ;;  %s2135_s6 = inlined_call_operand.vmem [shape: f32[1,256], index: 6, kind: input, shape index: {}]   ;;  %s2136_s7 = inlined_call_operand.vmem [shape: bf16[256,128], index: 7, kind: input, shape index: {}]   ;;  %s2137_s8 = inlined_call_operand.vmem [shape: f32[1,128], index: 8, kind: input, shape index: {}]   ;;  %s2138_s9 = inlined_call_operand.vmem [shape: f32[128,8], index: 9, kind: input, shape index: {}]   ;;  %s2139_s10 = inlined_call_operand.vmem [shape: f32[1,8], index: 10, kind: input, shape index: {}]   ;;  %s2140_s11 = inlined_call_operand.vmem [shape: f32[8,8], index: 11, kind: output, shape index: {}]  }
   0x1   :  { %17 = vsyncpa [#allocation5], 0  ;;  %s1896_s17 = smov [#allocation2]  }
   0x2   :  { %s29_s18 = sshll.u32 %s1896_s17, 4  ;;  %s30_s18 = int_to_ptr.vmem [resolvable:$true] %s29_s18 }
   0x3   :  { %s1860_s19 = scalar_lea.vmem %s30_s18, 8192  ;;  %p1865_p1 = scmp.lt.s32.totalorder %s30_s18, %s30_s18 }
   0x4   :  { %p1861_p0 = scmp.ne.s32.totalorder %s30_s18, %s1860_s19  ;;  %p1866_p2 = scmp.lt.s32.totalorder %s1860_s19, %s1860_s19 }
   0x6   :  { %p1867_p3 = por %p1866_p2, %p1865_p1 }
   0x8   :  { %p1868_p4 = pnand %p1867_p3, %p1861_p0 }
   0xa   :  { %1871 = shalt.err (!%p1868_p4)
}
   0xb   :  { %s1897_s20 = smov 256   ;;  %s1898_s21 = smov 16  }
   0xc   :  { %35 = dma.hbm_to_vmem [thread:$0]  %s2132_s3, 8192, %s30_s18, [#allocation3], %s1897_s20, %s1897_s20, %s1898_s21  }
   0xd   :  { %s1899_s24 = smov [#allocation4]  }
   0xe   :  { %s43_s25 = sshll.u32 %s1899_s24, 4  ;;  %s44_s25 = int_to_ptr.vmem [resolvable:$true] %s43_s25 }
   0xf   :  { %s1880_s26 = scalar_lea.vmem %s44_s25, 8192  ;;  %p1885_p6 = scmp.lt.s32.totalorder %s44_s25, %s44_s25 }
  0x10   :  { %p1881_p5 = scmp.ne.s32.totalorder %s44_s25, %s1880_s26  ;;  %p1886_p7 = scmp.lt.s32.totalorder %s1880_s26, %s1880_s26 }
  0x12   :  { %p1887_p8 = por %p1886_p7, %p1885_p6 }
  0x14   :  { %p1888_p9 = pnand %p1887_p8, %p1881_p5 }
  0x16   :  { %1891 = shalt.err (!%p1888_p9)
}
  0x17   :  { %s1900_s27 = smov 128   ;;  %s1901_s28 = smov 8  }
  0x18   :  { %49 = dma.hbm_to_vmem [thread:$0]  %s2134_s5, 8192, %s44_s25, [#allocation5], %s1900_s27, %s1900_s27, %s1901_s28  }
  0x19   :  { %1892 = dma.done.wait [#allocation3], 8192  }
  0x1a   :  { %1893 = vsyncadd [#allocation3], 4294959104 }
  0x1b   :  { %1894 = dma.done.wait [#allocation5], 8192  }
  0x1c   :  { %1895 = vsyncadd [#allocation5], 4294959104  ;;  %v1902_v0 = vmov 0.0   ;;  %v69_v1 = vld [vmem:[%s2130_s1 + $0x8] sm:$0xff]  ;;  %v68_v2 = vld [vmem:[%s2130_s1] sm:$0xff]  ;;  %vm82_vm0 = vcmask 64512  }
  0x1d   :  { %150 = vmatprep.mubr.f32.mxu0 %v1902_v0  ;;  %v67_v3 = vld [vmem:[%s2129_s0] sm:$0xff]  ;;  %116 = vmatprep.subr.mxu0 %v69_v1  ;;  %v1646_v5 = vld [vmem:[#allocation2 + $0xe8] ss:$16 sps:$4 sm:$0xff]   ;;  %v1648_v6 = vld [vmem:[#allocation2 + $0xec] ss:$16 sps:$4 sm:$0xff]   ;;  %vm1903_vm1 = vmmov 0  }
  0x1e   :  { %v1644_v4 = vld [vmem:[#allocation2 + $0xe4] ss:$16 sps:$4 sm:$0xff]   ;;  %117 = vmatpush1.msra.mxu0 %v68_v2  ;;  %v1649_v7 = vld [vmem:[#allocation2 + $0xe0] ss:$16 sps:$4 sm:$0xff]   ;;  %v1652_v9 = vld [vmem:[#allocation2 + $0xc8] ss:$16 sps:$4 sm:$0xff]  }
  0x1f   :  { %1415 = vmatmul.mubr.msk.f32.vlgmr.msra.gmra.mxu0 %vm82_vm0, %v67_v3  ;;  %567 = vmatprep.subr.bf16.mxu1 %v1644_v4  ;;  %v1650_v8 = vld [vmem:[#allocation2 + $0xc4] ss:$16 sps:$4 sm:$0xff]   ;;  %v1654_v10 = vld [vmem:[#allocation2 + $0xcc] ss:$16 sps:$4 sm:$0xff]   ;;  %v1655_v11 = vld [vmem:[#allocation2 + $0xc0] ss:$16 sps:$4 sm:$0xff]  }
  0x20   :  { %608 = vmatprep.subr.bf16.mxu0 %v1648_v6  ;;  %568 = vmatpush1.bf16.msra.mxu1 %v1649_v7  ;;  %v1656_v12 = vld [vmem:[#allocation2 + $0xa4] ss:$16 sps:$4 sm:$0xff]   ;;  %v1658_v13 = vld [vmem:[#allocation2 + $0xa8] ss:$16 sps:$4 sm:$0xff]   ;;  %v1660_v14 = vld [vmem:[#allocation2 + $0xac] ss:$16 sps:$4 sm:$0xff]   ;;  %v72_v7 = vlaneseq }
  0x21   :  { %609 = vmatpush1.bf16.msra.mxu0 %v1646_v5  ;;  %569 = vmatprep.subr.bf16.mxu1 %v1650_v8  ;;  %v1661_v15 = vld [vmem:[#allocation2 + $0xa0] ss:$16 sps:$4 sm:$0xff]   ;;  %v1662_v16 = vld [vmem:[#allocation2 + $0x84] ss:$16 sps:$4 sm:$0xff]   ;;  %v1666_v17 = vld [vmem:[#allocation2 + $0x8c] ss:$16 sps:$4 sm:$0xff]  }
  0x22   :  { %610 = vmatprep.subr.bf16.mxu0 %v1654_v10  ;;  %v1664_v18 = vld [vmem:[#allocation2 + $0x88] ss:$16 sps:$4 sm:$0xff]   ;;  %v1667_v19 = vld [vmem:[#allocation2 + $0x80] ss:$16 sps:$4 sm:$0xff]   ;;  %v1668_v20 = vld [vmem:[#allocation2 + $0x64] ss:$16 sps:$4 sm:$0xff]  }
  0x23   :  { %v1672_v21 = vld [vmem:[#allocation2 + $0x6c] ss:$16 sps:$4 sm:$0xff]   ;;  %v1670_v22 = vld [vmem:[#allocation2 + $0x68] ss:$16 sps:$4 sm:$0xff]   ;;  %v1673_v23 = vld [vmem:[#allocation2 + $0x60] ss:$16 sps:$4 sm:$0xff]  }
  0x24   :  { %570 = vmatpush1.bf16.msra.mxu1 %v1655_v11  ;;  %v1674_v24 = vld [vmem:[#allocation2 + $0x44] ss:$16 sps:$4 sm:$0xff]   ;;  %v1678_v25 = vld [vmem:[#allocation2 + $0x4c] ss:$16 sps:$4 sm:$0xff]   ;;  %v1676_v26 = vld [vmem:[#allocation2 + $0x48] ss:$16 sps:$4 sm:$0xff]  }
  0x25   :  { %611 = vmatpush1.bf16.msra.mxu0 %v1652_v9  ;;  %571 = vmatprep.subr.bf16.mxu1 %v1656_v12  ;;  %v1679_v27 = vld [vmem:[#allocation2 + $0x40] ss:$16 sps:$4 sm:$0xff]   ;;  %v1680_v28 = vld [vmem:[#allocation2 + $0x24] ss:$16 sps:$4 sm:$0xff]   ;;  %v1684_v29 = vld [vmem:[#allocation2 + $0x2c] ss:$16 sps:$4 sm:$0xff]  }
  0x26   :  { %612 = vmatprep.subr.bf16.mxu0 %v1660_v14  ;;  %v1682_v30 = vld [vmem:[#allocation2 + $0x28] ss:$16 sps:$4 sm:$0xff]   ;;  %v1685_v31 = vld [vmem:[#allocation2 + $0x20] ss:$16 sps:$4 sm:$0xff]   ;;  %v1686_v32 = vld [vmem:[#allocation2 + $0x4] ss:$16 sps:$4 sm:$0xff]  }
  0x27   :  { %v1690_v33 = vld [vmem:[#allocation2 + $0xc] ss:$16 sps:$4 sm:$0xff]   ;;  %v1688_v34 = vld [vmem:[#allocation2 + $0x8] ss:$16 sps:$4 sm:$0xff]   ;;  %v1691_v35 = vld [vmem:[#allocation2] ss:$16 sps:$4 sm:$0xff]  }
  0x28   :  { %572 = vmatpush1.bf16.msra.mxu1 %v1661_v15  ;;  %v1692_v36 = vld [vmem:[#allocation2 + $0x1e4] ss:$16 sps:$4 sm:$0xff]   ;;  %v1696_v37 = vld [vmem:[#allocation2 + $0x1ec] ss:$16 sps:$4 sm:$0xff]   ;;  %v1694_v38 = vld [vmem:[#allocation2 + $0x1e8] ss:$16 sps:$4 sm:$0xff]  }
  0x29   :  { %613 = vmatpush1.bf16.msra.mxu0 %v1658_v13  ;;  %573 = vmatprep.subr.bf16.mxu1 %v1662_v16  ;;  %v1697_v39 = vld [vmem:[#allocation2 + $0x1e0] ss:$16 sps:$4 sm:$0xff]   ;;  %v1698_v40 = vld [vmem:[#allocation2 + $0x1c4] ss:$16 sps:$4 sm:$0xff]   ;;  %v1702_v41 = vld [vmem:[#allocation2 + $0x1cc] ss:$16 sps:$4 sm:$0xff]  }
  0x2a   :  { %614 = vmatprep.subr.bf16.mxu0 %v1666_v17  ;;  %v1700_v42 = vld [vmem:[#allocation2 + $0x1c8] ss:$16 sps:$4 sm:$0xff]   ;;  %v1703_v43 = vld [vmem:[#allocation2 + $0x1c0] ss:$16 sps:$4 sm:$0xff]   ;;  %v1704_v44 = vld [vmem:[#allocation2 + $0x1a4] ss:$16 sps:$4 sm:$0xff]  }
  0x2b   :  { %v1708_v45 = vld [vmem:[#allocation2 + $0x1ac] ss:$16 sps:$4 sm:$0xff]   ;;  %v1709_v46 = vld [vmem:[#allocation2 + $0x1a0] ss:$16 sps:$4 sm:$0xff]   ;;  %v1706_v47 = vld [vmem:[#allocation2 + $0x1a8] ss:$16 sps:$4 sm:$0xff]  }
  0x2c   :  { %574 = vmatpush1.bf16.msra.mxu1 %v1667_v19  ;;  %v1710_v48 = vld [vmem:[#allocation2 + $0x184] ss:$16 sps:$4 sm:$0xff]   ;;  %v1714_v49 = vld [vmem:[#allocation2 + $0x18c] ss:$16 sps:$4 sm:$0xff]   ;;  %v1715_v50 = vld [vmem:[#allocation2 + $0x180] ss:$16 sps:$4 sm:$0xff]  }
  0x2d   :  { %615 = vmatpush1.bf16.msra.mxu0 %v1664_v18  ;;  %575 = vmatprep.subr.bf16.mxu1 %v1668_v20  ;;  %v1712_v51 = vld [vmem:[#allocation2 + $0x188] ss:$16 sps:$4 sm:$0xff]   ;;  %v1716_v52 = vld [vmem:[#allocation2 + $0x164] ss:$16 sps:$4 sm:$0xff]   ;;  %v1720_v53 = vld [vmem:[#allocation2 + $0x16c] ss:$16 sps:$4 sm:$0xff]  }
  0x2e   :  { %616 = vmatprep.subr.bf16.mxu0 %v1672_v21  ;;  %v1721_v54 = vld [vmem:[#allocation2 + $0x160] ss:$16 sps:$4 sm:$0xff]   ;;  %v1718_v55 = vld [vmem:[#allocation2 + $0x168] ss:$16 sps:$4 sm:$0xff]   ;;  %v1722_v56 = vld [vmem:[#allocation2 + $0x144] ss:$16 sps:$4 sm:$0xff]  }
  0x2f   :  { %v1726_v57 = vld [vmem:[#allocation2 + $0x14c] ss:$16 sps:$4 sm:$0xff]   ;;  %v1727_v58 = vld [vmem:[#allocation2 + $0x140] ss:$16 sps:$4 sm:$0xff]   ;;  %v1724_v59 = vld [vmem:[#allocation2 + $0x148] ss:$16 sps:$4 sm:$0xff]  }
  0x30   :  { %576 = vmatpush1.bf16.msra.mxu1 %v1673_v23  ;;  %v1728_v60 = vld [vmem:[#allocation2 + $0x124] ss:$16 sps:$4 sm:$0xff]   ;;  %v1732_v61 = vld [vmem:[#allocation2 + $0x12c] ss:$16 sps:$4 sm:$0xff]   ;;  %v1730_v62 = vld [vmem:[#allocation2 + $0x128] ss:$16 sps:$4 sm:$0xff]  }
  0x31   :  { %617 = vmatpush1.bf16.msra.mxu0 %v1670_v22  ;;  %577 = vmatprep.subr.bf16.mxu1 %v1674_v24  ;;  %v1733_v63 = vld [vmem:[#allocation2 + $0x120] ss:$16 sps:$4 sm:$0xff]   ;;  %v1734_v1 = vld [vmem:[#allocation2 + $0x104] ss:$16 sps:$4 sm:$0xff]   ;;  %v1738_v2 = vld [vmem:[#allocation2 + $0x10c] ss:$16 sps:$4 sm:$0xff]  }
  0x32   :  { %618 = vmatprep.subr.bf16.mxu0 %v1678_v25  ;;  %v1736_v3 = vld [vmem:[#allocation2 + $0x108] ss:$16 sps:$4 sm:$0xff]   ;;  %v1739_v4 = vld [vmem:[#allocation2 + $0x100] ss:$16 sps:$4 sm:$0xff]   ;;  %v1742_v5 = vld [vmem:[#allocation4 + $0x74] ss:$8 sps:$4 sm:$0xff]  }
  0x33   :  { %v1745_v6 = vld [vmem:[#allocation4 + $0x174] ss:$8 sps:$4 sm:$0xff]   ;;  %v1981_v8 = vshrl.u32 %v72_v7, 7  ;;  %v70_v10 = vld [vmem:[%s2131_s2] sm:$0x3] }
  0x34   :  { %578 = vmatpush1.bf16.msra.mxu1 %v1679_v27  ;;  %v1740_v21 = vld [vmem:[#allocation4 + $0x70] ss:$8 sps:$4 sm:$0xff]   ;;  %v1748_v24 = vld [vmem:[#allocation4 + $0x64] ss:$8 sps:$4 sm:$0xff]   ;;  %v1749_v27 = vld [vmem:[#allocation4 + $0x160] ss:$8 sps:$4 sm:$0xff]  }
  0x35   :  { %619 = vmatpush1.bf16.msra.mxu0 %v1676_v26  ;;  %579 = vmatprep.subr.bf16.mxu1 %v1680_v28  ;;  %v1984_v9 = vsub.s32 0, %v1981_v8  ;;  %v1990_v11 = vsub.s32 1, %v1981_v8  ;;  %v1743_v22 = vld [vmem:[#allocation4 + $0x170] ss:$8 sps:$4 sm:$0xff]   ;;  %v1751_v25 = vld [vmem:[#allocation4 + $0x164] ss:$8 sps:$4 sm:$0xff]  }
  0x36   :  { %620 = vmatprep.subr.bf16.mxu0 %v1684_v29  ;;  %v1746_v26 = vld [vmem:[#allocation4 + $0x60] ss:$8 sps:$4 sm:$0xff]   ;;  %v1754_v28 = vld [vmem:[#allocation4 + $0x54] ss:$8 sps:$4 sm:$0xff]   ;;  %v1812_v7 = vld [vmem:[#allocation4 + $0xb0] ss:$8 sps:$4 sm:$0xff]  }
  0x37   :  { %v75_v12 = vrot.slane %v70_v10, %v1984_v9  ;;  %v79_v13 = vrot.slane %v70_v10, %v1990_v11  ;;  %v1757_v29 = vld [vmem:[#allocation4 + $0x154] ss:$8 sps:$4 sm:$0xff]   ;;  %v1815_v10 = vld [vmem:[#allocation4 + $0x1b0] ss:$8 sps:$4 sm:$0xff]  }
  0x38   :  { %580 = vmatpush1.bf16.msra.mxu1 %v1685_v31  ;;  %v1755_v31 = vld [vmem:[#allocation4 + $0x150] ss:$8 sps:$4 sm:$0xff]  }
  0x39   :  { %621 = vmatpush1.bf16.msra.mxu0 %v1682_v30  ;;  %581 = vmatprep.subr.bf16.mxu1 %v1686_v32  ;;  %v1752_v30 = vld [vmem:[#allocation4 + $0x50] ss:$8 sps:$4 sm:$0xff]   ;;  %v1760_v32 = vld [vmem:[#allocation4 + $0x44] ss:$8 sps:$4 sm:$0xff]  }
  0x3a   :  { %622 = vmatprep.subr.bf16.mxu0 %v1690_v33  ;;  %v1763_v33 = vld [vmem:[#allocation4 + $0x144] ss:$8 sps:$4 sm:$0xff]  }
  0x3c   :  { %582 = vmatpush1.bf16.msra.mxu1 %v1691_v35  ;;  %v1761_v35 = vld [vmem:[#allocation4 + $0x140] ss:$8 sps:$4 sm:$0xff]  }
  0x3d   :  { %623 = vmatpush1.bf16.msra.mxu0 %v1688_v34  ;;  %583 = vmatprep.subr.bf16.mxu1 %v1692_v36  ;;  %v1758_v34 = vld [vmem:[#allocation4 + $0x40] ss:$8 sps:$4 sm:$0xff]   ;;  %v1766_v36 = vld [vmem:[#allocation4 + $0x34] ss:$8 sps:$4 sm:$0xff]  }
  0x3e   :  { %624 = vmatprep.subr.bf16.mxu0 %v1696_v37  ;;  %v1769_v37 = vld [vmem:[#allocation4 + $0x134] ss:$8 sps:$4 sm:$0xff]  }
  0x40   :  { %584 = vmatpush2.bf16.msra.mxu1 %v1697_v39  ;;  %v1767_v39 = vld [vmem:[#allocation4 + $0x130] ss:$8 sps:$4 sm:$0xff]  }
  0x41   :  { %625 = vmatpush2.bf16.msra.mxu0 %v1694_v38  ;;  %585 = vmatprep.subr.bf16.mxu1 %v1698_v40  ;;  %v1764_v38 = vld [vmem:[#allocation4 + $0x30] ss:$8 sps:$4 sm:$0xff]   ;;  %v1772_v40 = vld [vmem:[#allocation4 + $0x24] ss:$8 sps:$4 sm:$0xff]  }
  0x42   :  { %626 = vmatprep.subr.bf16.mxu0 %v1702_v41  ;;  %v1775_v41 = vld [vmem:[#allocation4 + $0x124] ss:$8 sps:$4 sm:$0xff]  }
  0x44   :  { %586 = vmatpush2.bf16.msra.mxu1 %v1703_v43  ;;  %v1773_v43 = vld [vmem:[#allocation4 + $0x120] ss:$8 sps:$4 sm:$0xff]  }
  0x45   :  { %627 = vmatpush2.bf16.msra.mxu0 %v1700_v42  ;;  %587 = vmatprep.subr.bf16.mxu1 %v1704_v44  ;;  %v1770_v42 = vld [vmem:[#allocation4 + $0x20] ss:$8 sps:$4 sm:$0xff]   ;;  %v1778_v44 = vld [vmem:[#allocation4 + $0x14] ss:$8 sps:$4 sm:$0xff]  }
  0x46   :  { %628 = vmatprep.subr.bf16.mxu0 %v1708_v45  ;;  %v1781_v45 = vld [vmem:[#allocation4 + $0x114] ss:$8 sps:$4 sm:$0xff]  }
  0x48   :  { %588 = vmatpush2.bf16.msra.mxu1 %v1709_v46  ;;  %v1776_v46 = vld [vmem:[#allocation4 + $0x10] ss:$8 sps:$4 sm:$0xff]  }
  0x49   :  { %629 = vmatpush2.bf16.msra.mxu0 %v1706_v47  ;;  %589 = vmatprep.subr.bf16.mxu1 %v1710_v48  ;;  %v1779_v47 = vld [vmem:[#allocation4 + $0x110] ss:$8 sps:$4 sm:$0xff]   ;;  %v1784_v48 = vld [vmem:[#allocation4 + $0x4] ss:$8 sps:$4 sm:$0xff]  }
  0x4a   :  { %630 = vmatprep.subr.bf16.mxu0 %v1714_v49  ;;  %v1787_v49 = vld [vmem:[#allocation4 + $0x104] ss:$8 sps:$4 sm:$0xff]  }
  0x4c   :  { %590 = vmatpush2.bf16.msra.mxu1 %v1715_v50  ;;  %v1782_v50 = vld [vmem:[#allocation4] ss:$8 sps:$4 sm:$0xff]  }
  0x4d   :  { %631 = vmatpush2.bf16.msra.mxu0 %v1712_v51  ;;  %591 = vmatprep.subr.bf16.mxu1 %v1716_v52  ;;  %v1785_v51 = vld [vmem:[#allocation4 + $0x100] ss:$8 sps:$4 sm:$0xff]   ;;  %v1790_v52 = vld [vmem:[#allocation4 + $0xf4] ss:$8 sps:$4 sm:$0xff]  }
  0x4e   :  { %632 = vmatprep.subr.bf16.mxu0 %v1720_v53  ;;  %v1793_v53 = vld [vmem:[#allocation4 + $0x1f4] ss:$8 sps:$4 sm:$0xff]  }
  0x50   :  { %592 = vmatpush2.bf16.msra.mxu1 %v1721_v54  ;;  %v1788_v54 = vld [vmem:[#allocation4 + $0xf0] ss:$8 sps:$4 sm:$0xff]  }
  0x51   :  { %633 = vmatpush2.bf16.msra.mxu0 %v1718_v55  ;;  %593 = vmatprep.subr.bf16.mxu1 %v1722_v56  ;;  %v1791_v55 = vld [vmem:[#allocation4 + $0x1f0] ss:$8 sps:$4 sm:$0xff]   ;;  %v1796_v56 = vld [vmem:[#allocation4 + $0xe4] ss:$8 sps:$4 sm:$0xff]  }
  0x52   :  { %634 = vmatprep.subr.bf16.mxu0 %v1726_v57  ;;  %v1799_v57 = vld [vmem:[#allocation4 + $0x1e4] ss:$8 sps:$4 sm:$0xff]  }
  0x54   :  { %594 = vmatpush2.bf16.msra.mxu1 %v1727_v58  ;;  %v1794_v58 = vld [vmem:[#allocation4 + $0xe0] ss:$8 sps:$4 sm:$0xff]  }
  0x55   :  { %635 = vmatpush2.bf16.msra.mxu0 %v1724_v59  ;;  %595 = vmatprep.subr.bf16.mxu1 %v1728_v60  ;;  %v1797_v59 = vld [vmem:[#allocation4 + $0x1e0] ss:$8 sps:$4 sm:$0xff]   ;;  %v1802_v60 = vld [vmem:[#allocation4 + $0xd4] ss:$8 sps:$4 sm:$0xff]  }
  0x56   :  { %636 = vmatprep.subr.bf16.mxu0 %v1732_v61  ;;  %v1805_v61 = vld [vmem:[#allocation4 + $0x1d4] ss:$8 sps:$4 sm:$0xff]  }
  0x58   :  { %596 = vmatpush2.bf16.msra.mxu1 %v1733_v63  ;;  %v1803_v63 = vld [vmem:[#allocation4 + $0x1d0] ss:$8 sps:$4 sm:$0xff]  }
  0x59   :  { %637 = vmatpush2.bf16.msra.mxu0 %v1730_v62  ;;  %597 = vmatprep.subr.bf16.mxu1 %v1734_v1  ;;  %v1800_v62 = vld [vmem:[#allocation4 + $0xd0] ss:$8 sps:$4 sm:$0xff]   ;;  %v1808_v1 = vld [vmem:[#allocation4 + $0xc4] ss:$8 sps:$4 sm:$0xff]  }
  0x5a   :  { %638 = vmatprep.subr.bf16.mxu0 %v1738_v2  ;;  %v1811_v2 = vld [vmem:[#allocation4 + $0x1c4] ss:$8 sps:$4 sm:$0xff]  }
  0x5c   :  { %598 = vmatpush2.bf16.msra.mxu1 %v1739_v4  ;;  %v1809_v4 = vld [vmem:[#allocation4 + $0x1c0] ss:$8 sps:$4 sm:$0xff]  }
  0x5d   :  { %639 = vmatpush2.bf16.msra.mxu0 %v1736_v3  ;;  %1053 = vmatprep.subr.bf16.mxu1 %v1742_v5  ;;  %v1806_v3 = vld [vmem:[#allocation4 + $0xc0] ss:$8 sps:$4 sm:$0xff]   ;;  %v1814_v5 = vld [vmem:[#allocation4 + $0xb4] ss:$8 sps:$4 sm:$0xff]  }
  0x5e   :  { %1094 = vmatprep.subr.bf16.mxu0 %v1745_v6  ;;  %v1817_v6 = vld [vmem:[#allocation4 + $0x1b4] ss:$8 sps:$4 sm:$0xff]  }
  0xdf   :  { %v152_v14 = vpop.f32.mrf.mxu0 }
  0xe0   :  { %v153_v15 = vadd.f32 %v152_v14, %v75_v12  ;;  %v1820_v12 = vld [vmem:[#allocation4 + $0xa4] ss:$8 sps:$4 sm:$0xff]   ;;  %v1818_v14 = vld [vmem:[#allocation4 + $0xa0] ss:$8 sps:$4 sm:$0xff]  }
  0xe1   :  { %v154_v16 = vpop.f32.mrf.mxu0 }
  0xe2   :  { %v155_v17 = vadd.f32 %v154_v16, %v79_v13  ;;  %v157_v18 = vmax.f32 %v153_v15, 0.0  ;;  %v1823_v13 = vld [vmem:[#allocation4 + $0x1a4] ss:$8 sps:$4 sm:$0xff]   ;;  %v1821_v15 = vld [vmem:[#allocation4 + $0x1a0] ss:$8 sps:$4 sm:$0xff]  }
  0xe3   :  { %v1826_v16 = vld [vmem:[#allocation4 + $0x94] ss:$8 sps:$4 sm:$0xff]  }
  0xe4   :  { %v158_v19 = vmax.f32 %v155_v17, 0.0  ;;  %v159_v23 = vpack.c.bf16 %v157_v18, %v157_v18  ;;  %v1829_v17 = vld [vmem:[#allocation4 + $0x194] ss:$8 sps:$4 sm:$0xff]   ;;  %v1824_v18 = vld [vmem:[#allocation4 + $0x90] ss:$8 sps:$4 sm:$0xff]  }
  0xe6   :  { %v160_v20 = vpack.c.bf16 %v158_v19, %v158_v19  ;;  %v1827_v19 = vld [vmem:[#allocation4 + $0x190] ss:$8 sps:$4 sm:$0xff]  }
  0xe8   :  { %599 = vmatprep.mubr.bf16.mxu1 %v160_v20  ;;  %640 = vmatprep.mubr.bf16.mxu0 %v160_v20  ;;  %v1832_v20 = vld [vmem:[#allocation4 + $0x84] ss:$8 sps:$4 sm:$0xff]  }
  0xe9   :  { %600 = vmatmul.mubr.bf16.vlgmr.msra.gmra.mxu1 %v159_v23  ;;  %641 = vmatmul.mubr.bf16.vlgmr.msra.gmra.mxu0 %v159_v23  ;;  %v1833_v23 = vld [vmem:[#allocation4 + $0x180] ss:$8 sps:$4 sm:$0xff]  }
  0xea   :  { %1054 = vmatpush1.bf16.msra.mxu1 %v1740_v21  ;;  %1095 = vmatpush1.bf16.msra.mxu0 %v1743_v22  ;;  %v1835_v21 = vld [vmem:[#allocation4 + $0x184] ss:$8 sps:$4 sm:$0xff]   ;;  %v1830_v22 = vld [vmem:[#allocation4 + $0x80] ss:$8 sps:$4 sm:$0xff]  }
  0xeb   :  { %1055 = vmatprep.subr.bf16.mxu1 %v1748_v24  ;;  %1096 = vmatprep.subr.bf16.mxu0 %v1751_v25  ;;  %v1836_v24 = vld [vmem:[%s2136_s7 + $0x78] sm:$0xff]   ;;  %v237_v25 = vsub.s32 2, %v1981_v8 }
  0xee   :  { %1056 = vmatpush1.bf16.msra.mxu1 %v1746_v26  ;;  %1097 = vmatpush1.bf16.msra.mxu0 %v1749_v27  ;;  %v225_v26 = vld [vmem:[%s2133_s4] sm:$0xf]  ;;  %v241_v27 = vsub.s32 3, %v1981_v8 }
  0xef   :  { %1057 = vmatprep.subr.bf16.mxu1 %v1754_v28  ;;  %1098 = vmatprep.subr.bf16.mxu0 %v1757_v29  ;;  %v230_v28 = vrot.slane %v225_v26, %v1984_v9  ;;  %v238_v29 = vrot.slane %v225_v26, %v237_v25 }
  0xf2   :  { %1058 = vmatpush1.bf16.msra.mxu1 %v1752_v30  ;;  %1099 = vmatpush1.bf16.msra.mxu0 %v1755_v31  ;;  %v234_v30 = vrot.slane %v225_v26, %v1990_v11  ;;  %v242_v31 = vrot.slane %v225_v26, %v241_v27 }
  0xf3   :  { %1059 = vmatprep.subr.bf16.mxu1 %v1760_v32  ;;  %1100 = vmatprep.subr.bf16.mxu0 %v1763_v33 }
  0xf6   :  { %1060 = vmatpush1.bf16.msra.mxu1 %v1758_v34  ;;  %1101 = vmatpush1.bf16.msra.mxu0 %v1761_v35 }
  0xf7   :  { %1061 = vmatprep.subr.bf16.mxu1 %v1766_v36  ;;  %1102 = vmatprep.subr.bf16.mxu0 %v1769_v37 }
  0xfa   :  { %1062 = vmatpush1.bf16.msra.mxu1 %v1764_v38  ;;  %1103 = vmatpush1.bf16.msra.mxu0 %v1767_v39 }
  0xfb   :  { %1063 = vmatprep.subr.bf16.mxu1 %v1772_v40  ;;  %1104 = vmatprep.subr.bf16.mxu0 %v1775_v41 }
  0xfe   :  { %1064 = vmatpush1.bf16.msra.mxu1 %v1770_v42  ;;  %1105 = vmatpush1.bf16.msra.mxu0 %v1773_v43 }
  0xff   :  { %1065 = vmatprep.subr.bf16.mxu1 %v1778_v44  ;;  %1106 = vmatprep.subr.bf16.mxu0 %v1781_v45 }
 0x102   :  { %1066 = vmatpush1.bf16.msra.mxu1 %v1776_v46  ;;  %1107 = vmatpush1.bf16.msra.mxu0 %v1779_v47 }
 0x103   :  { %1067 = vmatprep.subr.bf16.mxu1 %v1784_v48  ;;  %1108 = vmatprep.subr.bf16.mxu0 %v1787_v49  ;;  %v1837_v49 = vld [vmem:[%s2136_s7 + $0x38] sm:$0xff]  }
 0x106   :  { %1068 = vmatpush1.bf16.msra.mxu1 %v1782_v50  ;;  %1109 = vmatpush1.bf16.msra.mxu0 %v1785_v51 }
 0x107   :  { %1069 = vmatprep.subr.bf16.mxu1 %v1790_v52  ;;  %1110 = vmatprep.subr.bf16.mxu0 %v1793_v53  ;;  %v1838_v52 = vld [vmem:[%s2136_s7 + $0x70] sm:$0xff]  }
 0x108   :  { %v1839_v53 = vld [vmem:[%s2136_s7 + $0x30] sm:$0xff]  }
 0x10a   :  { %1070 = vmatpush2.bf16.msra.mxu1 %v1788_v54  ;;  %1111 = vmatpush2.bf16.msra.mxu0 %v1791_v55  ;;  %v1840_v54 = vld [vmem:[%s2136_s7 + $0x68] sm:$0xff]  }
 0x10b   :  { %1071 = vmatprep.subr.bf16.mxu1 %v1796_v56  ;;  %1112 = vmatprep.subr.bf16.mxu0 %v1799_v57  ;;  %v1841_v55 = vld [vmem:[%s2136_s7 + $0x28] sm:$0xff]   ;;  %v1842_v56 = vld [vmem:[%s2136_s7 + $0x60] sm:$0xff]  }
 0x10c   :  { %v1843_v57 = vld [vmem:[%s2136_s7 + $0x20] sm:$0xff]  }
 0x10e   :  { %1072 = vmatpush2.bf16.msra.mxu1 %v1794_v58  ;;  %1113 = vmatpush2.bf16.msra.mxu0 %v1797_v59  ;;  %v1844_v58 = vld [vmem:[%s2136_s7 + $0x58] sm:$0xff]  }
 0x10f   :  { %1073 = vmatprep.subr.bf16.mxu1 %v1802_v60  ;;  %1114 = vmatprep.subr.bf16.mxu0 %v1805_v61  ;;  %v1845_v59 = vld [vmem:[%s2136_s7 + $0x18] sm:$0xff]   ;;  %v1846_v60 = vld [vmem:[%s2136_s7 + $0x50] sm:$0xff]  }
 0x110   :  { %v1847_v61 = vld [vmem:[%s2136_s7 + $0x10] sm:$0xff]  }
 0x112   :  { %1074 = vmatpush2.bf16.msra.mxu1 %v1800_v62  ;;  %1115 = vmatpush2.bf16.msra.mxu0 %v1803_v63  ;;  %v1848_v62 = vld [vmem:[%s2136_s7 + $0x48] sm:$0xff]  }
 0x113   :  { %1075 = vmatprep.subr.bf16.mxu1 %v1808_v1  ;;  %1116 = vmatprep.subr.bf16.mxu0 %v1811_v2  ;;  %v1849_v63 = vld [vmem:[%s2136_s7 + $0x8] sm:$0xff]   ;;  %v1850_v1 = vld [vmem:[%s2136_s7 + $0x40] sm:$0xff]  }
 0x114   :  { %v1851_v2 = vld [vmem:[%s2136_s7] sm:$0xff]  }
 0x116   :  { %1076 = vmatpush2.bf16.msra.mxu1 %v1806_v3  ;;  %1117 = vmatpush2.bf16.msra.mxu0 %v1809_v4  ;;  %v1330_v3 = vld [vmem:[%s2138_s9 + $0x78] sm:$0xff]  ;;  %v1329_v4 = vld [vmem:[%s2138_s9 + $0x70] sm:$0xff] }
 0x117   :  { %1077 = vmatprep.subr.bf16.mxu1 %v1814_v5  ;;  %1118 = vmatprep.subr.bf16.mxu0 %v1817_v6  ;;  %v1328_v5 = vld [vmem:[%s2138_s9 + $0x68] sm:$0xff]  ;;  %v1327_v6 = vld [vmem:[%s2138_s9 + $0x60] sm:$0xff] }
 0x11a   :  { %1078 = vmatpush2.bf16.msra.mxu1 %v1812_v7  ;;  %1119 = vmatpush2.bf16.msra.mxu0 %v1815_v10  ;;  %v1326_v7 = vld [vmem:[%s2138_s9 + $0x58] sm:$0xff]  ;;  %v1325_v10 = vld [vmem:[%s2138_s9 + $0x50] sm:$0xff] }
 0x11b   :  { %1079 = vmatprep.subr.bf16.mxu1 %v1820_v12  ;;  %1120 = vmatprep.subr.bf16.mxu0 %v1823_v13  ;;  %v1324_v12 = vld [vmem:[%s2138_s9 + $0x48] sm:$0xff]  ;;  %v1323_v13 = vld [vmem:[%s2138_s9 + $0x40] sm:$0xff] }
 0x11e   :  { %1080 = vmatpush2.bf16.msra.mxu1 %v1818_v14  ;;  %1121 = vmatpush2.bf16.msra.mxu0 %v1821_v15  ;;  %v1322_v14 = vld [vmem:[%s2138_s9 + $0x38] sm:$0xff]  ;;  %v1321_v15 = vld [vmem:[%s2138_s9 + $0x30] sm:$0xff] }
 0x11f   :  { %1081 = vmatprep.subr.bf16.mxu1 %v1826_v16  ;;  %1122 = vmatprep.subr.bf16.mxu0 %v1829_v17  ;;  %v1320_v16 = vld [vmem:[%s2138_s9 + $0x28] sm:$0xff]  ;;  %v721_v17 = vld [vmem:[%s2135_s6] sm:$0x3] }
 0x122   :  { %1082 = vmatpush2.bf16.msra.mxu1 %v1824_v18  ;;  %1123 = vmatpush2.bf16.msra.mxu0 %v1827_v19  ;;  %v726_v18 = vrot.slane %v721_v17, %v1984_v9  ;;  %v730_v19 = vrot.slane %v721_v17, %v1990_v11  ;;  %v1319_v9 = vld [vmem:[%s2138_s9 + $0x20] sm:$0xff]  ;;  %v1318_v11 = vld [vmem:[%s2138_s9 + $0x18] sm:$0xff] }
 0x123   :  { %1083 = vmatprep.subr.bf16.mxu1 %v1832_v20  ;;  %1124 = vmatprep.subr.bf16.mxu0 %v1835_v21 }
 0x126   :  { %1084 = vmatpush2.bf16.msra.mxu1 %v1830_v22  ;;  %1125 = vmatpush2.bf16.msra.mxu0 %v1833_v23 }
 0x127   :  { %1601 = vmatprep.subr.mxu0 %v1902_v0  ;;  %1562 = vmatprep.subr.bf16.mxu1 %v1836_v24 }
 0x1a9   :  { %v601_v32 = vpop.f32.mrf.mxu1  ;;  %v642_v33 = vpop.f32.mrf.mxu0 }
 0x1aa   :  { %v602_v34 = vadd.f32 %v601_v32, %v230_v28  ;;  %v643_v35 = vadd.f32 %v642_v33, %v238_v29 }
 0x1ab   :  { %v603_v36 = vpop.f32.mrf.mxu1  ;;  %v644_v37 = vpop.f32.mrf.mxu0 }
 0x1ac   :  { %v604_v38 = vadd.f32 %v603_v36, %v234_v30  ;;  %v645_v39 = vadd.f32 %v644_v37, %v242_v31  ;;  %v649_v40 = vmax.f32 %v602_v34, 0.0  ;;  %v651_v41 = vmax.f32 %v643_v35, 0.0  ;;  %v1317_v36 = vld [vmem:[%s2138_s9 + $0x10] sm:$0xff]  ;;  %v1316_v37 = vld [vmem:[%s2138_s9 + $0x8] sm:$0xff] }
 0x1ad   :  { %v605_v42 = vpop.f32.mrf.mxu1  ;;  %v646_v43 = vpop.f32.mrf.mxu0 }
 0x1ae   :  { %v650_v44 = vmax.f32 %v604_v38, 0.0  ;;  %v652_v8 = vmax.f32 %v645_v39, 0.0  ;;  %v653_v50 = vpack.c.bf16 %v649_v40, %v649_v40  ;;  %v655_v51 = vpack.c.bf16 %v651_v41, %v651_v41  ;;  %v1315_v38 = vld [vmem:[%s2138_s9] sm:$0xff] }
 0x1af   :  { %v606_v45 = vpop.f32.mrf.mxu1  ;;  %v647_v46 = vpop.f32.mrf.mxu0  ;;  %v1544_v40 = vld [vmem:[%s2137_s8] ss:$0 sm:$0xff] }
 0x1b0   :  { %v654_v47 = vpack.c.bf16 %v650_v44, %v650_v44  ;;  %v656_v48 = vpack.c.bf16 %v652_v8, %v652_v8  ;;  %v1561_v46 = vld [vmem:[%s2139_s10] ss:$0 sm:$0xff] }
 0x1b2   :  { %1085 = vmatprep.mubr.bf16.mxu1 %v654_v47  ;;  %1126 = vmatprep.mubr.bf16.mxu0 %v656_v48 }
 0x1b3   :  { %1086 = vmatmul.mubr.bf16.vlgmr.msra.gmra.mxu1 %v653_v50  ;;  %1127 = vmatmul.mubr.bf16.vlgmr.msra.gmra.mxu0 %v655_v51 }
 0x1b4   :  { %1563 = vmatpush3.bf16.msra.mxu1 %v1837_v49  ;;  %1602 = vmatpush3.msra.mxu0 %v1330_v3 }
 0x1b5   :  { %1564 = vmatprep.subr.bf16.mxu1 %v1838_v52  ;;  %1603 = vmatprep.subr.mxu0 %v1902_v0 }
 0x1b6   :  { %1604 = vmatpush3.msra.mxu0 %v1329_v4  ;;  %1633 = vmatprep.mubr.msk.f32.mxu0 %vm1903_vm1, %v1902_v0 }
 0x1b7   :  { %1605 = vmatprep.subr.mxu0 %v1902_v0 }
 0x1b8   :  { %1565 = vmatpush3.bf16.msra.mxu1 %v1839_v53  ;;  %1606 = vmatpush3.msra.mxu0 %v1328_v5 }
 0x1b9   :  { %1566 = vmatprep.subr.bf16.mxu1 %v1840_v54  ;;  %1607 = vmatprep.subr.mxu0 %v1902_v0 }
 0x1ba   :  { %1608 = vmatpush3.msra.mxu0 %v1327_v6 }
 0x1bb   :  { %1609 = vmatprep.subr.mxu0 %v1902_v0 }
 0x1bc   :  { %1567 = vmatpush3.bf16.msra.mxu1 %v1841_v55  ;;  %1610 = vmatpush3.msra.mxu0 %v1326_v7 }
 0x1bd   :  { %1568 = vmatprep.subr.bf16.mxu1 %v1842_v56  ;;  %1611 = vmatprep.subr.mxu0 %v1902_v0 }
 0x1be   :  { %1612 = vmatpush3.msra.mxu0 %v1325_v10 }
 0x1bf   :  { %1613 = vmatprep.subr.mxu0 %v1902_v0 }
 0x1c0   :  { %1569 = vmatpush3.bf16.msra.mxu1 %v1843_v57  ;;  %1614 = vmatpush3.msra.mxu0 %v1324_v12 }
 0x1c1   :  { %1570 = vmatprep.subr.bf16.mxu1 %v1844_v58  ;;  %1615 = vmatprep.subr.mxu0 %v1902_v0 }
 0x1c2   :  { %1616 = vmatpush3.msra.mxu0 %v1323_v13 }
 0x1c3   :  { %1617 = vmatprep.subr.mxu0 %v1902_v0 }
 0x1c4   :  { %1571 = vmatpush3.bf16.msra.mxu1 %v1845_v59  ;;  %1618 = vmatpush3.msra.mxu0 %v1322_v14 }
 0x1c5   :  { %1572 = vmatprep.subr.bf16.mxu1 %v1846_v60  ;;  %1619 = vmatprep.subr.mxu0 %v1902_v0 }
 0x1c6   :  { %1620 = vmatpush3.msra.mxu0 %v1321_v15 }
 0x1c7   :  { %1621 = vmatprep.subr.mxu0 %v1902_v0 }
 0x1c8   :  { %1573 = vmatpush3.bf16.msra.mxu1 %v1847_v61  ;;  %1622 = vmatpush3.msra.mxu0 %v1320_v16 }
 0x1c9   :  { %1574 = vmatprep.subr.bf16.mxu1 %v1848_v62  ;;  %1623 = vmatprep.subr.mxu0 %v1902_v0 }
 0x1ca   :  { %1624 = vmatpush3.msra.mxu0 %v1319_v9 }
 0x1cb   :  { %1625 = vmatprep.subr.mxu0 %v1902_v0 }
 0x1cc   :  { %1575 = vmatpush3.bf16.msra.mxu1 %v1849_v63  ;;  %1626 = vmatpush3.msra.mxu0 %v1318_v11 }
 0x1cd   :  { %1576 = vmatprep.subr.bf16.mxu1 %v1850_v1  ;;  %1627 = vmatprep.subr.mxu0 %v1902_v0 }
 0x1ce   :  { %1628 = vmatpush3.msra.mxu0 %v1317_v36 }
 0x1cf   :  { %1629 = vmatprep.subr.mxu0 %v1902_v0 }
 0x1d0   :  { %1577 = vmatpush3.bf16.msra.mxu1 %v1851_v2  ;;  %1630 = vmatpush3.msra.mxu0 %v1316_v37 }
 0x1d1   :  { %1631 = vmatprep.subr.mxu0 %v1902_v0 }
 0x1d2   :  { %1632 = vmatpush3.msra.mxu0 %v1315_v38 }
 0x273   :  { %v1087_v20 = vpop.f32.mrf.mxu1  ;;  %v1128_v21 = vpop.f32.mrf.mxu0 }
 0x274   :  { %v1088_v22 = vadd.f32 %v1087_v20, %v726_v18 }
 0x275   :  { %v1089_v23 = vpop.f32.mrf.mxu1  ;;  %v1130_v24 = vpop.f32.mrf.mxu0 }
 0x276   :  { %v1129_v25 = vadd.f32 %v1128_v21, %v1088_v22  ;;  %v1090_v26 = vadd.f32 %v1089_v23, %v730_v19 }
 0x277   :  { %v1091_v27 = vpop.f32.mrf.mxu1  ;;  %v1132_v28 = vpop.f32.mrf.mxu0 }
 0x278   :  { %v1131_v29 = vadd.f32 %v1130_v24, %v1090_v26  ;;  %v1135_v30 = vmax.f32 %v1129_v25, 0.0 }
 0x279   :  { %v1092_v31 = vpop.f32.mrf.mxu1  ;;  %v1133_v32 = vpop.f32.mrf.mxu0 }
 0x27a   :  { %v1136_v33 = vmax.f32 %v1131_v29, 0.0  ;;  %v1137_v35 = vpack.c.bf16 %v1135_v30, %v1135_v30 }
 0x27c   :  { %v1138_v34 = vpack.c.bf16 %v1136_v33, %v1136_v33 }
 0x27e   :  { %1306 = vmatprep.mubr.bf16.mxu1 %v1138_v34 }
 0x27f   :  { %1307 = vmatmul.mubr.bf16.vlgmr.msra.gmra.mxu1 %v1137_v35 }
 0x33f   :  { %v1578_v39 = vpop.f32.mrf.mxu1 }
 0x341   :  { %v1579_v41 = vpop.f32.mrf.mxu1 }
 0x342   :  { %v1580_v42 = vadd.f32 %v1579_v41, %v1578_v39 }
 0x343   :  { %v1581_v43 = vpop.f32.mrf.mxu1 }
 0x344   :  { %v1309_v44 = vadd.f32 %v1580_v42, %v1544_v40 }
 0x345   :  { %v1582_v8 = vpop.f32.mrf.mxu1 }
 0x346   :  { %v1314_v45 = vmax.f32 %v1309_v44, 0.0 }
 0x348   :  { %1634 = vmatmul.mubr.f32.vlgmr.msra.gmra.mxu0 %v1314_v45 }
 0x408   :  { %v1404_v47 = vpop.f32.mrf.mxu0 }
 0x409   :  { %v1405_v48 = vadd.f32 %v1561_v46, %v1404_v47 }
 0x40a   :  { %v1635_v49 = vpop.f32.mrf.mxu0 }
 0x40b   :  { %1408 = vst.msk [vmem:[%s2140_s11] sm:$0xff] %vm82_vm0, %v1405_v48 }
 0x40c   :  { %1413 = vsyncpa [#allocation3], 1 }
 0x40d   :  { %1414 = vsyncpa [#allocation5], 1 }

</bundles_post_ra>
